<compile_context>
chip_gen: v7x
topology: tpu7x:2x2x1
jax: 0.10.0
libtpu: 0.0.40
codegen_flags: <defaults>
</compile_context>

<pallas_src>
import math
import functools

import jax
import jax.numpy as jnp
from jax.experimental import pallas as pl
from jax.experimental.pallas import tpu as pltpu


# ----------------------------- budgets & helpers --------------------------- #

@functools.lru_cache(maxsize=1)
def _vmem_budget_bytes():
    """Per-generation VMEM budget (leave headroom below physical capacity)."""
    phys = None
    try:
        phys = getattr(pltpu.get_tpu_info(), "vmem_capacity_bytes", None)
    except Exception:
        phys = None
    if phys is None:
        return 48 * 1024 * 1024                   # safe on every generation
    if phys >= 100 * 1024 * 1024:                 # v5e / v6e / v4 / v5p: 128 MiB
        return 100 * 1024 * 1024
    # v7x (64 MiB physical) and smaller parts: ~3/4 of physical.
    return max((phys * 3) // 4, phys - (16 << 20))


def _round_up(x, m):
    return (x + m - 1) // m * m


def _pad_granularity(n):
    # Pad N so large tiles divide n_pad whenever the zero-padding overhead on
    # the N x N adjacency stays small (<~10% per dimension).
    for g in (1024, 512, 256):
        if n >= 2 * g and _round_up(n, g) <= int(n * 1.10):
            return g
    return 128


def _prep2d(a, rows, cols, dtype):
    """Cast / zero-pad only when needed (avoids a full HBM pre-pass when the
    caller already stores the operand in the compute dtype at padded shape)."""
    # TODO(synk): expose CompilerParams(allow_input_fusion=...) so a leftover
    # convert/pad fuses into the pallas_call input DMA instead of materializing.
    if a.dtype != dtype:
        a = a.astype(dtype)
    if a.shape[0] != rows or a.shape[1] != cols:
        a = jnp.pad(a, ((0, rows - a.shape[0]), (0, cols - a.shape[1])))
    return a


def _tile_candidates(n, cap):
    cands = [t for t in (128, 256, 512, 1024, 2048)
             if t <= min(n, cap) and n % t == 0]
    return cands or [min(n, 128)]


# ----------------------------- kernels ------------------------------------- #

def _make_spmm_kernel(r_resident, apply_w, apply_d, apply_b):
    """acc += A_tile @ R_tile over the reduction axis; on the last step
    optionally apply (@ W), (* d row scale), (+ bias), then store the tile."""

    def kernel(*refs):
        it = iter(refs)
        a_ref = next(it)                           # (tm, tk)                streamed
        r_ref = next(it)                           # (nk, tk, Fr) resident / (tk, Fr) streamed
        w_ref = next(it) if apply_w else None      # (Fr, Fout_p) f32        resident
        d_ref = next(it) if apply_d else None      # (tm, 1) f32
        b_ref = next(it) if apply_b else None      # (1, Fout_p) f32         resident
        o_ref = next(it)                           # (tm, Fout_p)
        acc_ref = next(it)                         # (tm, Fr) f32 scratch

        k = pl.program_id(1)

        @pl.when(k == 0)
        def _init():
            acc_ref[...] = jnp.zeros_like(acc_ref)

        r_blk = r_ref[k] if r_resident else r_ref[...]
        acc_ref[...] += jnp.dot(a_ref[...], r_blk,
                                preferred_element_type=jnp.float32)

        @pl.when(k == pl.num_programs(1) - 1)
        def _finalize():
            out = acc_ref[...]
            if apply_w:
                # W stays in f32: this matmul runs once per row tile, so it is
                # cheap and avoids an f32->bf16 round-trip on the accumulator.
                out = jnp.dot(out.astype(w_ref.dtype), w_ref[...],
                              preferred_element_type=jnp.float32)
            if apply_d:
                out = out * d_ref[...]
            if apply_b:
                out = out + b_ref[...]
            o_ref[...] = out.astype(o_ref.dtype)

    return kernel


def _xw_kernel(x_ref, w_ref, o_ref, acc_ref):
    """K-tiled support = X @ W with an f32 VMEM accumulator."""
    k = pl.program_id(1)

    @pl.when(k == 0)
    def _init():
        acc_ref[...] = jnp.zeros_like(acc_ref)

    acc_ref[...] += jnp.dot(x_ref[...], w_ref[...],
                            preferred_element_type=jnp.float32)

    @pl.when(k == pl.num_programs(1) - 1)
    def _store():
        o_ref[...] = acc_ref[...].astype(o_ref.dtype)


# ------------------------- pallas_call wrappers ----------------------------- #

def _tiled_spmm(a, r, *, weight=None, d=None, bias=None,
                out_dtype=jnp.float32, vmem_budget=None):
    """(a @ r) [@ weight] [* d] [+ bias]  with a: [Np, Np], r: [Np, Fr] (padded)."""
    if vmem_budget is None:
        vmem_budget = _vmem_budget_bytes()
    usable = int(vmem_budget * 0.9)

    n_pad = a.shape[0]
    fr = r.shape[1]
    fout_p = weight.shape[1] if weight is not None else fr

    a_isz = jnp.dtype(a.dtype).itemsize
    r_isz = jnp.dtype(r.dtype).itemsize
    out_isz = jnp.dtype(out_dtype).itemsize
    w_bytes = (weight.size * jnp.dtype(weight.dtype).itemsize
               if weight is not None else 0)
    b_bytes = fout_p * 4 if bias is not None else 0
    has_d = d is not None
    r_total = n_pad * fr * r_isz

    # Keep X / support fully VMEM-resident when it comfortably fits: it is then
    # DMA'd from HBM exactly once instead of once per row tile.
    r_resident = (2 * r_total) <= usable // 2

    def cost(tm_, tk_, r_res):
        c = 2 * tm_ * tk_ * a_isz                                   # adj (double buffered)
        c += (2 * r_total) if r_res else (2 * tk_ * fr * r_isz)     # right operand
        c += 2 * w_bytes                                            # grid-invariant W
        c += (2 * tm_ * 4) if has_d else 0
        c += 2 * b_bytes
        c += 2 * tm_ * fout_p * out_isz                             # output tile
        c += tm_ * fr * 4                                           # f32 accumulator
        return c

    # Keep >=2 (>=4 for big graphs) steps on the 'parallel' row axis so the
    # v7x megacore split still has work to shard.
    if n_pad < 256:
        tm_cap = 1024
    else:
        tm_cap = min(1024, n_pad // (4 if n_pad >= 2048 else 2))
    tm_cands = _tile_candidates(n_pad, tm_cap)
    tk_cands = _tile_candidates(n_pad, 2048)

    def pick(r_res):
        best, best_area = (tm_cands[0], tk_cands[0]), 0
        for tm_ in tm_cands:
            for tk_ in tk_cands:
                if cost(tm_, tk_, r_res) > usable:
                    continue
                area = tm_ * tk_
                if area > best_area or (area == best_area and tk_ > best[1]):
                    best, best_area = (tm_, tk_), area
        return best, best_area

    (tm, tk), area = pick(r_resident)
    if r_resident and area == 0:      # residency squeezed the tiles out: stream
        r_resident = False
        (tm, tk), _ = pick(False)

    if r_resident:
        nk = n_pad // tk
        r_arg = r.reshape(nk, tk, fr)                      # free row-major split
        r_spec = pl.BlockSpec((nk, tk, fr), lambda i, k: (0, 0, 0))
    else:
        r_arg = r
        r_spec = pl.BlockSpec((tk, fr), lambda i, k: (k, 0))

    in_specs = [
        pl.BlockSpec((tm, tk), lambda i, k: (i, k)),       # adj tile (dominant stream)
        r_spec,                                            # right operand
    ]
    args = [a, r_arg]
    if weight is not None:
        # Constant index map => fetched once (allocation is still 2x, accounted
        # for in the footprint model above).
        in_specs.append(pl.BlockSpec(weight.shape, lambda i, k: (0, 0)))
        args.append(weight)
    if d is not None:
        in_specs.append(pl.BlockSpec((tm, 1), lambda i, k: (i, 0)))
        args.append(d)
    if bias is not None:
        in_specs.append(pl.BlockSpec((1, fout_p), lambda i, k: (0, 0)))
        args.append(bias)

    kernel = _make_spmm_kernel(r_resident, weight is not None,
                               d is not None, bias is not None)

    return pl.pallas_call(
        kernel,
        out_shape=jax.ShapeDtypeStruct((n_pad, fout_p), out_dtype),
        grid_spec=pltpu.PrefetchScalarGridSpec(
            num_scalar_prefetch=0,
            grid=(n_pad // tm, n_pad // tk),
            in_specs=in_specs,
            out_specs=pl.BlockSpec((tm, fout_p), lambda i, k: (i, 0)),
            scratch_shapes=[pltpu.VMEM((tm, fr), jnp.float32)],
        ),
        compiler_params=pltpu.CompilerParams(
            dimension_semantics=("parallel", "arbitrary"),
            vmem_limit_bytes=vmem_budget,
        ),
    )(*args)


def _tiled_xw(x, w, out_dtype, vmem_budget=None):
    """support = X @ W, tiled over rows AND over the Fin reduction axis."""
    if vmem_budget is None:
        vmem_budget = _vmem_budget_bytes()
    usable = int(vmem_budget * 0.9)

    n_pad, fin_p = x.shape
    fout_p = w.shape[1]
    x_isz = jnp.dtype(x.dtype).itemsize
    w_isz = jnp.dtype(w.dtype).itemsize
    o_isz = jnp.dtype(out_dtype).itemsize

    def cost(tm_, tkf_):
        return (2 * tm_ * tkf_ * x_isz + 2 * tkf_ * fout_p * w_isz
                + 2 * tm_ * fout_p * o_isz + tm_ * fout_p * 4)

    tm_cands = _tile_candidates(n_pad, 1024)
    tkf_cands = _tile_candidates(fin_p, 2048)
    best, best_area = (tm_cands[0], tkf_cands[0]), 0
    for tm_ in tm_cands:
        for tkf_ in tkf_cands:
            if cost(tm_, tkf_) > usable:
                continue
            area = tm_ * tkf_
            if area > best_area:
                best, best_area = (tm_, tkf_), area
    tm, tkf = best

    return pl.pallas_call(
        _xw_kernel,
        out_shape=jax.ShapeDtypeStruct((n_pad, fout_p), out_dtype),
        grid_spec=pltpu.PrefetchScalarGridSpec(
            num_scalar_prefetch=0,
            grid=(n_pad // tm, fin_p // tkf),
            in_specs=[pl.BlockSpec((tm, tkf), lambda i, k: (i, k)),
                      pl.BlockSpec((tkf, fout_p), lambda i, k: (k, 0))],
            out_specs=pl.BlockSpec((tm, fout_p), lambda i, k: (i, 0)),
            scratch_shapes=[pltpu.VMEM((tm, fout_p), jnp.float32)],
        ),
        compiler_params=pltpu.CompilerParams(
            dimension_semantics=("parallel", "arbitrary"),
            vmem_limit_bytes=vmem_budget,
        ),
    )(x, w)


def graph_convolution(x, adj, weight, bias=None, D=None, *,
                      compute_dtype=jnp.bfloat16):
    """GCN forward:  (D @) (adj @ (x @ weight)) (+ bias).

    D may be:
      * None
      * a 1-D array of length N : treated as diag(D), fused as a row scale
      * a 2-D [N, N] matrix     : general case, applied via a second tiled matmul
    """
    n, fin = x.shape
    assert weight.shape[0] == fin
    fout = weight.shape[1]

    budget = _vmem_budget_bytes()
    n_pad = _round_up(n, _pad_granularity(n))
    fin_p = _round_up(fin, 128)      # lane-dense feature dims
    fout_p = _round_up(fout, 128)

    cdt = jnp.dtype(compute_dtype)

    adj_p = _prep2d(adj, n_pad, n_pad, cdt)          # no-op if adj already cdt/padded
    w_f32 = _prep2d(weight, fin_p, fout_p, jnp.float32)
    b_p = (None if bias is None
           else _prep2d(bias.reshape(1, fout), 1, fout_p, jnp.float32))

    d_vec = None   # diagonal D -> fused row scale
    d_mat = None   # dense D    -> second tiled matmul
    if D is not None:
        if D.ndim == 1:
            d_vec = _prep2d(D.reshape(n, 1), n_pad, 1, jnp.float32)
        else:
            d_mat = _prep2d(D, n_pad, n_pad, cdt)

    bias_first = b_p if d_mat is None else None      # with dense D, bias comes last
    # With a dense D the intermediate (adj @ support) is re-streamed by the
    # second matmul -> emit it directly in the compute dtype.
    first_out_dtype = jnp.float32 if d_mat is None else cdt

    if fin <= fout:
        # (adj @ X) @ W : the N^2 matmul runs at the narrower width Fin; W (f32)
        # is applied once per row tile in the epilogue.
        # TODO(synk): when compute-bound with fin_p == 128 on v6e/v7x the
        # 256-wide MXU is only half filled -- prefer the support path there.
        x_p = _prep2d(x, n_pad, fin_p, cdt)
        out_p = _tiled_spmm(adj_p, x_p, weight=w_f32, d=d_vec, bias=bias_first,
                            out_dtype=first_out_dtype, vmem_budget=budget)
    else:
        # support = X @ W paid exactly once (f32 inputs, f32 accumulation),
        # then adj @ support at width Fout in the compute dtype.
        x_p = _prep2d(x, n_pad, fin_p, jnp.float32)
        support = _tiled_xw(x_p, w_f32, cdt, vmem_budget=budget)
        out_p = _tiled_spmm(adj_p, support, weight=None, d=d_vec, bias=bias_first,
                            out_dtype=first_out_dtype, vmem_budget=budget)

    if d_mat is not None:
        out_p = _tiled_spmm(d_mat, out_p, weight=None, d=None, bias=b_p,
                            out_dtype=jnp.float32, vmem_budget=budget)

    return out_p[:n, :fout]


# ----------------------------- main ----------------------------------------- #

if __name__ == "__main__":
    N, IN_F, OUT_F = 8, 16, 32

    key = jax.random.PRNGKey(0)
    k_x, k_adj, k_d, k_d2, k_w, k_b, k_x2, k_w2 = jax.random.split(key, 8)

    x = jax.random.normal(k_x, (N, IN_F), dtype=jnp.float32)

    # Symmetric row-normalized adjacency with self loops.
    a = (jax.random.uniform(k_adj, (N, N)) > 0.5).astype(jnp.float32)
    adj = ((a + a.T) > 0).astype(jnp.float32) + jnp.eye(N, dtype=jnp.float32)
    adj = adj / jnp.sum(adj, axis=1, keepdims=True)

    # Deterministic parameter init matching reset_parameters().
    stdv = 1.0 / math.sqrt(OUT_F)
    weight = jax.random.uniform(k_w, (IN_F, OUT_F), minval=-stdv, maxval=stdv,
                                dtype=jnp.float32)
    bias = jax.random.uniform(k_b, (OUT_F,), minval=-stdv, maxval=stdv,
                              dtype=jnp.float32)

    d_diag = jax.random.uniform(k_d, (N,), minval=0.5, maxval=1.5)   # diagonal D
    D_dense = jax.random.uniform(k_d2, (N, N), dtype=jnp.float32)    # general D

    # Pure-JAX references (f32).
    ref = adj @ (x @ weight) + bias
    ref_diag = jnp.diag(d_diag) @ (adj @ (x @ weight)) + bias
    ref_dense = D_dense @ (adj @ (x @ weight)) + bias

    # 1) f32, D=None -- tight check (fused (adj@X)@W path since Fin < Fout).
    out = graph_convolution(x, adj, weight, bias, D=None,
                            compute_dtype=jnp.float32)
    assert out.shape == (N, OUT_F)
    assert jnp.allclose(out, ref, atol=1e-4, rtol=1e-4)

    # 2) default bf16 streaming, diagonal D fused as a row scale -- loose check.
    out_diag = graph_convolution(x, adj, weight, bias, D=d_diag)
    assert jnp.allclose(out_diag, ref_diag, atol=3e-2, rtol=3e-2)

    # 3) general dense D, f32 -- tight check (chained second tiled matmul).
    out_dense = graph_convolution(x, adj, weight, bias, D=D_dense,
                                  compute_dtype=jnp.float32)
    assert jnp.allclose(out_dense, ref_dense, atol=1e-4, rtol=1e-4)

    # 4) Fin > Fout path (K-tiled support precompute), bias=None.
    x2 = jax.random.normal(k_x2, (N, OUT_F), dtype=jnp.float32)       # 32 -> 16
    w2 = jax.random.uniform(k_w2, (OUT_F, IN_F), minval=-stdv, maxval=stdv,
                            dtype=jnp.float32)
    ref2 = adj @ (x2 @ w2)
    out2 = graph_convolution(x2, adj, w2, bias=None, D=None,
                             compute_dtype=jnp.float32)
    assert jnp.allclose(out2, ref2, atol=1e-4, rtol=1e-4)

    jax.block_until_ready((out, out_diag, out_dense, out2))
    print("KERNEL_OK")
</pallas_src>

<mosaic_0001>
module attributes {stable_mosaic.version = 11 : i64} {
  func.func @kernel(%arg0: i32, %arg1: i32, %arg2: memref<128x128xf32, #tpu.memory_space<vmem>>, %arg3: memref<1x128x128xf32, #tpu.memory_space<vmem>>, %arg4: memref<128x128xf32, #tpu.memory_space<vmem>>, %arg5: memref<1x128xf32, #tpu.memory_space<vmem>>, %arg6: memref<128x128xf32, #tpu.memory_space<vmem>>, %arg7: memref<128x128xf32, #tpu.memory_space<vmem>>) attributes {dimension_semantics = [#tpu.dimension_semantics<parallel>, #tpu.dimension_semantics<arbitrary>], iteration_bounds = array<i64: 1, 1>, scalar_prefetch = 0 : i64, scratch_operands = 1 : i64, tpu.core_type = #tpu.core_type<tc>, window_params = [{transform_indices = @transform_0, window_bounds = array<i64: 128, 128>}, {pipeline_mode = #tpu.pipeline_mode<synchronous>, transform_indices = @transform_1, window_bounds = array<i64: 1, 128, 128>}, {pipeline_mode = #tpu.pipeline_mode<synchronous>, transform_indices = @transform_2, window_bounds = array<i64: 128, 128>}, {pipeline_mode = #tpu.pipeline_mode<synchronous>, transform_indices = @transform_3, window_bounds = array<i64: 1, 128>}, {transform_indices = @transform_4, window_bounds = array<i64: 128, 128>}]} {
    %c0_i32 = arith.constant 0 : i32
    %0 = arith.cmpi eq, %arg1, %c0_i32 : i32
    %1 = arith.extui %0 : i1 to i32
    %c0_i32_0 = arith.constant 0 : i32
    %2 = arith.cmpi ne, %1, %c0_i32_0 : i32
    scf.if %2 {
      %cst_10 = arith.constant 0.000000e+00 : f32
      %14 = vector.broadcast %cst_10 : f32 to vector<128x128xf32>
      %c0_11 = arith.constant 0 : index
      %c0_12 = arith.constant 0 : index
      %15 = vector.load %arg7[%c0_11, %c0_12] : memref<128x128xf32, #tpu.memory_space<vmem>>, vector<128x128xf32>
      tpu.vector_store %arg7[%c0_11, %c0_12], %14 {strides = array<i32>} : memref<128x128xf32, #tpu.memory_space<vmem>>, vector<128x128xf32>,
    } else {
    }
    %3 = arith.index_cast %arg1 : i32 to index
    %c0 = arith.constant 0 : index
    %c0_1 = arith.constant 0 : index
    %4 = vector.load %arg3[%3, %c0, %c0_1] : memref<1x128x128xf32, #tpu.memory_space<vmem>>, vector<1x128x128xf32>
    %5 = vector.shape_cast %4 : vector<1x128x128xf32> to vector<128x128xf32>
    %c0_2 = arith.constant 0 : index
    %c0_3 = arith.constant 0 : index
    %6 = vector.load %arg7[%c0_2, %c0_3] : memref<128x128xf32, #tpu.memory_space<vmem>>, vector<128x128xf32>
    %c0_4 = arith.constant 0 : index
    %c0_5 = arith.constant 0 : index
    %7 = vector.load %arg2[%c0_4, %c0_5] : memref<128x128xf32, #tpu.memory_space<vmem>>, vector<128x128xf32>
    %cst = arith.constant dense<0.000000e+00> : vector<128x128xf32>
    %8 = tpu.matmul %7, %5, %cst {dimension_numbers = #tpu.dot_dimension_numbers<[1], [0], [0], [1], [0, 0, 1, 1], [], []>} : vector<128x128xf32>, vector<128x128xf32>, vector<128x128xf32> -> vector<128x128xf32>
    %9 = arith.addf %6, %8 : vector<128x128xf32>
    %c0_6 = arith.constant 0 : index
    %c0_7 = arith.constant 0 : index
    %10 = vector.load %arg7[%c0_6, %c0_7] : memref<128x128xf32, #tpu.memory_space<vmem>>, vector<128x128xf32>
    tpu.vector_store %arg7[%c0_6, %c0_7], %9 {strides = array<i32>} : memref<128x128xf32, #tpu.memory_space<vmem>>, vector<128x128xf32>,
    %c0_i32_8 = arith.constant 0 : i32
    %11 = arith.cmpi eq, %arg1, %c0_i32_8 : i32
    %12 = arith.extui %11 : i1 to i32
    %c0_i32_9 = arith.constant 0 : i32
    %13 = arith.cmpi ne, %12, %c0_i32_9 : i32
    scf.if %13 {
      %c0_10 = arith.constant 0 : index
      %c0_11 = arith.constant 0 : index
      %14 = vector.load %arg7[%c0_10, %c0_11] : memref<128x128xf32, #tpu.memory_space<vmem>>, vector<128x128xf32>
      %c0_12 = arith.constant 0 : index
      %c0_13 = arith.constant 0 : index
      %15 = vector.load %arg4[%c0_12, %c0_13] : memref<128x128xf32, #tpu.memory_space<vmem>>, vector<128x128xf32>
      %cst_14 = arith.constant dense<0.000000e+00> : vector<128x128xf32>
      %16 = tpu.matmul %14, %15, %cst_14 {dimension_numbers = #tpu.dot_dimension_numbers<[1], [0], [0], [1], [0, 0, 1, 1], [], []>} : vector<128x128xf32>, vector<128x128xf32>, vector<128x128xf32> -> vector<128x128xf32>
      %c0_15 = arith.constant 0 : index
      %c0_16 = arith.constant 0 : index
      %17 = vector.load %arg5[%c0_15, %c0_16] : memref<1x128xf32, #tpu.memory_space<vmem>>, vector<1x128xf32>
      %18 = vector.broadcast %17 : vector<1x128xf32> to vector<128x128xf32>
      %19 = arith.addf %16, %18 : vector<128x128xf32>
      %c0_17 = arith.constant 0 : index
      %c0_18 = arith.constant 0 : index
      %20 = vector.load %arg6[%c0_17, %c0_18] : memref<128x128xf32, #tpu.memory_space<vmem>>, vector<128x128xf32>
      tpu.vector_store %arg6[%c0_17, %c0_18], %19 {strides = array<i32>} : memref<128x128xf32, #tpu.memory_space<vmem>>, vector<128x128xf32>,
    } else {
    }
    return
  }
  func.func @transform_0(%arg0: i32, %arg1: i32) -> (i32, i32) {
    %c0_i32 = arith.constant 0 : i32
    return %arg0, %arg1 : i32, i32
  }
  func.func @transform_1(%arg0: i32, %arg1: i32) -> (i32, i32, i32) {
    %c0_i32 = arith.constant 0 : i32
    %c0_i32_0 = arith.constant 0 : i32
    %c0_i32_1 = arith.constant 0 : i32
    %c0_i32_2 = arith.constant 0 : i32
    return %c0_i32, %c0_i32_0, %c0_i32_1 : i32, i32, i32
  }
  func.func @transform_2(%arg0: i32, %arg1: i32) -> (i32, i32) {
    %c0_i32 = arith.constant 0 : i32
    %c0_i32_0 = arith.constant 0 : i32
    %c0_i32_1 = arith.constant 0 : i32
    return %c0_i32, %c0_i32_0 : i32, i32
  }
  func.func @transform_3(%arg0: i32, %arg1: i32) -> (i32, i32) {
    %c0_i32 = arith.constant 0 : i32
    %c0_i32_0 = arith.constant 0 : i32
    %c0_i32_1 = arith.constant 0 : i32
    return %c0_i32, %c0_i32_0 : i32, i32
  }
  func.func @transform_4(%arg0: i32, %arg1: i32) -> (i32, i32) {
    %c0_i32 = arith.constant 0 : i32
    %c0_i32_0 = arith.constant 0 : i32
    return %arg0, %c0_i32 : i32, i32
  }
}

</mosaic_0001>

<bundles_post_ra>
// kernel: tpu_custom_call.1
= control target key start
LH: loop header
LB: loop body
LE: loop exit
PB: predicated region body
PF: predicated region fallthrough
CT: control target
= control target key end

     0   :  { %9 = vsyncpa [#allocation4], 0  ;;  %s969_s0 = inlined_call_operand.hbm [shape: f32[128,128], index: 0, kind: input, shape index: {}]   ;;  %s970_s1 = inlined_call_operand.hbm [shape: f32[1,128,128], index: 1, kind: input, shape index: {}]   ;;  %s971_s2 = inlined_call_operand.hbm [shape: f32[128,128], index: 2, kind: input, shape index: {}]   ;;  %s972_s3 = inlined_call_operand.vmem [shape: f32[1,128], index: 3, kind: input, shape index: {}]   ;;  %s973_s4 = inlined_call_operand.hbm [shape: f32[128,128], index: 4, kind: output, shape index: {}]  }
   0x1   :  { %10 = vsyncpa [#allocation7], 0 }
   0x2   :  { %11 = vsyncpa [#allocation5], 0  ;;  %s868_s15 = smov [#allocation6]   ;;  %s869_s17 = smov [#allocation3]  }
   0x3   :  { %s29_s16 = sshll.u32 %s868_s15, 4  ;;  %s17_s18 = sshll.u32 %s869_s17, 4  ;;  %s30_s16 = int_to_ptr.vmem [resolvable:$true] %s29_s16  ;;  %s899_s18 = int_to_ptr.vmem [resolvable:$true] %s17_s18 }
   0x4   :  { %s774_s21 = scalar_lea.hbm %s970_s1, 2048 }
   0x5   :  { %p775_p0 = scmp.ne.s32.totalorder %s970_s1, %s774_s21  ;;  %p778_p1 = scmp.lt.u32.totalorder %s774_s21, %s970_s1 }
   0x7   :  { %p780_p2 = pnand %p778_p1, %p775_p0 }
   0x9   :  { %783 = shalt.err (!%p780_p2)
}
   0xa   :  { %s784_s26 = scalar_lea.vmem %s30_s16, 2048  ;;  %p789_p4 = scmp.lt.s32.totalorder %s30_s16, %s30_s16 }
   0xb   :  { %p785_p3 = scmp.ne.s32.totalorder %s30_s16, %s784_s26  ;;  %p790_p5 = scmp.lt.s32.totalorder %s784_s26, %s784_s26 }
   0xd   :  { %p791_p6 = por %p790_p5, %p789_p4 }
   0xf   :  { %p792_p7 = pnand %p791_p6, %p785_p3 }
  0x11   :  { %795 = shalt.err (!%p792_p7)
}
  0x12   :  { %s870_s27 = smov 128   ;;  %s871_s28 = smov 8  }
  0x13   :  { %35 = dma.hbm_to_vmem [thread:$0]  %s970_s1, 2048, %s30_s16, [#allocation7], %s870_s27, %s870_s27, %s871_s28  }
  0x14   :  { %s796_s7 = scalar_lea.hbm %s969_s0, 2048 }
  0x15   :  { %p797_p8 = scmp.ne.s32.totalorder %s969_s0, %s796_s7  ;;  %p800_p9 = scmp.lt.u32.totalorder %s796_s7, %s969_s0 }
  0x17   :  { %p802_p10 = pnand %p800_p9, %p797_p8 }
  0x19   :  { %805 = shalt.err (!%p802_p10)
}
  0x1a   :  { %s806_s12 = scalar_lea.vmem %s899_s18, 2048  ;;  %p811_p12 = scmp.lt.s32.totalorder %s899_s18, %s899_s18 }
  0x1b   :  { %p807_p11 = scmp.ne.s32.totalorder %s899_s18, %s806_s12  ;;  %p812_p13 = scmp.lt.s32.totalorder %s806_s12, %s806_s12 }
  0x1d   :  { %p813_p0 = por %p812_p13, %p811_p12 }
  0x1f   :  { %p814_p1 = pnand %p813_p0, %p807_p11 }
  0x21   :  { %817 = shalt.err (!%p814_p1)
}
  0x22   :  { %23 = dma.hbm_to_vmem [thread:$0]  %s969_s0, 2048, %s899_s18, [#allocation4], %s870_s27, %s870_s27, %s871_s28  }
  0x23   :  { %s872_s14 = smov [#allocation8]   ;;  %s818_s19 = scalar_lea.hbm %s971_s2, 2048 }
  0x24   :  { %s41_s15 = sshll.u32 %s872_s14, 4  ;;  %p819_p2 = scmp.ne.s32.totalorder %s971_s2, %s818_s19  ;;  %s42_s15 = int_to_ptr.vmem [resolvable:$true] %s41_s15 }
  0x25   :  { %p822_p3 = scmp.lt.u32.totalorder %s818_s19, %s971_s2 }
  0x27   :  { %p824_p4 = pnand %p822_p3, %p819_p2 }
  0x29   :  { %827 = shalt.err (!%p824_p4)
}
  0x2a   :  { %s828_s24 = scalar_lea.vmem %s42_s15, 2048  ;;  %p833_p6 = scmp.lt.s32.totalorder %s42_s15, %s42_s15 }
  0x2b   :  { %p829_p5 = scmp.ne.s32.totalorder %s42_s15, %s828_s24  ;;  %p834_p7 = scmp.lt.s32.totalorder %s828_s24, %s828_s24 }
  0x2d   :  { %p835_p8 = por %p834_p7, %p833_p6 }
  0x2f   :  { %p836_p9 = pnand %p835_p8, %p829_p5 }
  0x31   :  { %839 = shalt.err (!%p836_p9)
}
  0x32   :  { %47 = dma.hbm_to_vmem [thread:$0]  %s971_s2, 2048, %s42_s15, [#allocation7], %s870_s27, %s870_s27, %s871_s28  }
  0x33   :  { %862 = dma.done.wait [#allocation4], 2048  }
  0x34   :  { %863 = vsyncadd [#allocation4], 4294965248 }
  0x35   :  { %864 = dma.done.wait [#allocation7], 4096  }
  0x36   :  { %865 = vsyncadd [#allocation7], 4294963200  ;;  %v81_v0 = vld [vmem:[#allocation6] sm:$0xff]  ;;  %v82_v1 = vld [vmem:[#allocation6 + $0x8] sm:$0xff] }
  0x37   :  { %v83_v2 = vld [vmem:[#allocation6 + $0x10] sm:$0xff]  ;;  %v704_v3 = vpack.c.bf16 %v82_v1, %v81_v0  ;;  %v84_v4 = vld [vmem:[#allocation6 + $0x18] sm:$0xff]  ;;  %v85_v6 = vld [vmem:[#allocation6 + $0x20] sm:$0xff] }
  0x38   :  { %v708_v5 = vpack.c.bf16 %v84_v4, %v83_v2  ;;  %v86_v7 = vld [vmem:[#allocation6 + $0x28] sm:$0xff]  ;;  %v113_v9 = vld [vmem:[#allocation3] sm:$0xff]  ;;  %v87_v10 = vld [vmem:[#allocation6 + $0x30] sm:$0xff] }
  0x39   :  { %705 = vmatprep.subr.bf16.mxu0 %v704_v3  ;;  %v712_v8 = vpack.c.bf16 %v86_v7, %v85_v6  ;;  %v88_v11 = vld [vmem:[#allocation6 + $0x38] sm:$0xff]  ;;  %624 = vmatprep.mubr.f32.mxu0 %v113_v9  ;;  %v89_v13 = vld [vmem:[#allocation6 + $0x40] sm:$0xff]  ;;  %v90_v14 = vld [vmem:[#allocation6 + $0x48] sm:$0xff] }
  0x3a   :  { %707 = vmatpush3.bf16.msra.mxu0 %v704_v3  ;;  %v716_v12 = vpack.c.bf16 %v88_v11, %v87_v10  ;;  %v325_v15 = vld [vmem:[#allocation8] sm:$0xff]  ;;  %v326_v16 = vld [vmem:[#allocation8 + $0x8] sm:$0xff]  ;;  %v327_v17 = vld [vmem:[#allocation8 + $0x10] sm:$0xff]  ;;  %v720_v21 = vpack.c.bf16 %v90_v14, %v89_v13 }
  0x3b   :  { %709 = vmatprep.subr.bf16.mxu0 %v708_v5  ;;  %v328_v18 = vld [vmem:[#allocation8 + $0x18] sm:$0xff]  ;;  %v736_v19 = vpack.c.bf16 %v326_v16, %v325_v15  ;;  %v329_v22 = vld [vmem:[#allocation8 + $0x20] sm:$0xff]  ;;  %v330_v23 = vld [vmem:[#allocation8 + $0x28] sm:$0xff] }
  0x3c   :  { %v740_v20 = vpack.c.bf16 %v328_v18, %v327_v17  ;;  %v91_v24 = vld [vmem:[#allocation6 + $0x50] sm:$0xff]  ;;  %v92_v25 = vld [vmem:[#allocation6 + $0x58] sm:$0xff]  ;;  %v744_v26 = vpack.c.bf16 %v330_v23, %v329_v22  ;;  %v93_v30 = vld [vmem:[#allocation6 + $0x60] sm:$0xff] }
  0x3d   :  { %737 = vmatprep.subr.bf16.mxu1 %v736_v19  ;;  %v724_v27 = vpack.c.bf16 %v92_v25, %v91_v24  ;;  %v331_v28 = vld [vmem:[#allocation8 + $0x30] sm:$0xff]  ;;  %v332_v29 = vld [vmem:[#allocation8 + $0x38] sm:$0xff]  ;;  %v94_v31 = vld [vmem:[#allocation6 + $0x68] sm:$0xff] }
  0x3e   :  { %711 = vmatpush3.bf16.msra.mxu0 %v708_v5  ;;  %739 = vmatpush3.bf16.msra.mxu1 %v736_v19  ;;  %v748_v32 = vpack.c.bf16 %v332_v29, %v331_v28  ;;  %v728_v33 = vpack.c.bf16 %v94_v31, %v93_v30  ;;  %v333_v34 = vld [vmem:[#allocation8 + $0x40] sm:$0xff]  ;;  %v334_v35 = vld [vmem:[#allocation8 + $0x48] sm:$0xff]  ;;  %v95_v36 = vld [vmem:[#allocation6 + $0x70] sm:$0xff] }
  0x3f   :  { %713 = vmatprep.subr.bf16.mxu0 %v712_v8  ;;  %741 = vmatprep.subr.bf16.mxu1 %v740_v20  ;;  %v96_v37 = vld [vmem:[#allocation6 + $0x78] sm:$0xff]  ;;  %v752_v38 = vpack.c.bf16 %v334_v35, %v333_v34  ;;  %v335_v40 = vld [vmem:[#allocation8 + $0x50] sm:$0xff]  ;;  %v337_v43 = vld [vmem:[#allocation8 + $0x60] sm:$0xff] }
  0x40   :  { %v732_v39 = vpack.c.bf16 %v96_v37, %v95_v36  ;;  %v336_v41 = vld [vmem:[#allocation8 + $0x58] sm:$0xff]  ;;  %v338_v44 = vld [vmem:[#allocation8 + $0x68] sm:$0xff]  ;;  %v115_v47 = vld [vmem:[#allocation3 + $0x10] sm:$0xff] }
  0x41   :  { %v756_v42 = vpack.c.bf16 %v336_v41, %v335_v40  ;;  %v114_v45 = vld [vmem:[#allocation3 + $0x8] sm:$0xff]  ;;  %v760_v46 = vpack.c.bf16 %v338_v44, %v337_v43  ;;  %v339_v48 = vld [vmem:[#allocation8 + $0x70] sm:$0xff]  ;;  %v340_v49 = vld [vmem:[#allocation8 + $0x78] sm:$0xff] }
  0x42   :  { %715 = vmatpush3.bf16.msra.mxu0 %v712_v8  ;;  %743 = vmatpush3.bf16.msra.mxu1 %v740_v20  ;;  %v116_v50 = vld [vmem:[#allocation3 + $0x18] sm:$0xff]  ;;  %v764_v51 = vpack.c.bf16 %v340_v49, %v339_v48  ;;  %v117_v52 = vld [vmem:[#allocation3 + $0x20] sm:$0xff]  ;;  %v118_v53 = vld [vmem:[#allocation3 + $0x28] sm:$0xff] }
  0x43   :  { %717 = vmatprep.subr.bf16.mxu0 %v716_v12  ;;  %745 = vmatprep.subr.bf16.mxu1 %v744_v26  ;;  %v119_v54 = vld [vmem:[#allocation3 + $0x30] sm:$0xff]  ;;  %v120_v55 = vld [vmem:[#allocation3 + $0x38] sm:$0xff]  ;;  %v121_v56 = vld [vmem:[#allocation3 + $0x40] sm:$0xff] }
  0x44   :  { %v122_v57 = vld [vmem:[#allocation3 + $0x48] sm:$0xff]  ;;  %v123_v58 = vld [vmem:[#allocation3 + $0x50] sm:$0xff]  ;;  %v124_v59 = vld [vmem:[#allocation3 + $0x58] sm:$0xff] }
  0x45   :  { %v125_v60 = vld [vmem:[#allocation3 + $0x60] sm:$0xff]  ;;  %v126_v61 = vld [vmem:[#allocation3 + $0x68] sm:$0xff]  ;;  %v127_v62 = vld [vmem:[#allocation3 + $0x70] sm:$0xff] }
  0x46   :  { %719 = vmatpush3.bf16.msra.mxu0 %v716_v12  ;;  %747 = vmatpush3.bf16.msra.mxu1 %v744_v26  ;;  %v128_v63 = vld [vmem:[#allocation3 + $0x78] sm:$0xff]  ;;  %v527_v16 = vld [vmem:[%s972_s3] ss:$0 sm:$0xff]  ;;  %s873_s3 = smov [#allocation9]  }
  0x47   :  { %721 = vmatprep.subr.bf16.mxu0 %v720_v21  ;;  %749 = vmatprep.subr.bf16.mxu1 %v748_v32  ;;  %s514_s26 = sshll.u32 %s873_s3, 4  ;;  %s515_s26 = int_to_ptr.vmem [resolvable:$true] %s514_s26 }
  0x48   :  { %s840_s29 = scalar_lea.vmem %s515_s26, 2048  ;;  %p845_p11 = scmp.lt.s32.totalorder %s515_s26, %s515_s26 }
  0x49   :  { %p841_p10 = scmp.ne.s32.totalorder %s515_s26, %s840_s29  ;;  %p846_p12 = scmp.lt.s32.totalorder %s840_s29, %s840_s29 }
  0x4a   :  { %723 = vmatpush3.bf16.msra.mxu0 %v720_v21  ;;  %751 = vmatpush3.bf16.msra.mxu1 %v748_v32 }
  0x4b   :  { %725 = vmatprep.subr.bf16.mxu0 %v724_v27  ;;  %753 = vmatprep.subr.bf16.mxu1 %v752_v38  ;;  %p847_p13 = por %p846_p12, %p845_p11 }
  0x4d   :  { %p848_p0 = pnand %p847_p13, %p841_p10 }
  0x4e   :  { %727 = vmatpush3.bf16.msra.mxu0 %v724_v27  ;;  %755 = vmatpush3.bf16.msra.mxu1 %v752_v38 }
  0x4f   :  { %729 = vmatprep.subr.bf16.mxu0 %v728_v33  ;;  %757 = vmatprep.subr.bf16.mxu1 %v756_v42 }
  0x52   :  { %731 = vmatpush3.bf16.msra.mxu0 %v728_v33  ;;  %759 = vmatpush3.bf16.msra.mxu1 %v756_v42 }
  0x53   :  { %733 = vmatprep.subr.bf16.mxu0 %v732_v39  ;;  %761 = vmatprep.subr.bf16.mxu1 %v760_v46 }
  0x56   :  { %735 = vmatpush3.bf16.msra.mxu0 %v732_v39  ;;  %763 = vmatpush3.bf16.msra.mxu1 %v760_v46 }
  0x57   :  { %765 = vmatprep.subr.bf16.mxu1 %v764_v51 }
  0x59   :  { %625 = vmatmul.mubr.f32.vlgmr.msra.gmra.mrb[0].mxu0 %v114_v45 }
  0x5a   :  { %627 = vmatprep.mubr.f32.mxu0 %v115_v47  ;;  %767 = vmatpush3.bf16.msra.mxu1 %v764_v51 }
  0x5d   :  { %628 = vmatmul.mubr.f32.gmra.mrb[2].mxu0 %v116_v50 }
  0x5e   :  { %630 = vmatprep.mubr.f32.mxu0 %v117_v52 }
  0x61   :  { %631 = vmatmul.mubr.f32.gmra.mrb[4].mxu0 %v118_v53 }
  0x62   :  { %633 = vmatprep.mubr.f32.mxu0 %v119_v54 }
  0x65   :  { %634 = vmatmul.mubr.f32.gmra.mrb[6].mxu0 %v120_v55 }
  0x66   :  { %636 = vmatprep.mubr.f32.mxu0 %v121_v56 }
  0x69   :  { %637 = vmatmul.mubr.f32.gmra.mrb[8].mxu0 %v122_v57 }
  0x6a   :  { %639 = vmatprep.mubr.f32.mxu0 %v123_v58 }
  0x6d   :  { %640 = vmatmul.mubr.f32.gmra.mrb[10].mxu0 %v124_v59 }
  0x6e   :  { %642 = vmatprep.mubr.f32.mxu0 %v125_v60 }
  0x71   :  { %643 = vmatmul.mubr.f32.gmra.mrb[12].mxu0 %v126_v61 }
  0x72   :  { %645 = vmatprep.mubr.f32.mxu0 %v127_v62 }
  0x75   :  { %646 = vmatmul.mubr.f32.gmra.mrb[14].mxu0 %v128_v63 }
 0x12c   :  { %v626_v0 = vpop.f32.mrb[0].mxu0 }
 0x12d   :  { %v195_v1 = vpop.f32.mrb[1].mxu0 }
 0x12e   :  { %680 = vmatprep.mubr.f32.mxu1 %v195_v1 }
 0x12f   :  { %681 = vmatmul.mubr.f32.vlgmr.msra.gmra.mrb[0].mxu1 %v626_v0 }
 0x130   :  { %v629_v2 = vpop.f32.mrb[2].mxu0 }
 0x131   :  { %v205_v3 = vpop.f32.mrb[3].mxu0 }
 0x132   :  { %683 = vmatprep.mubr.f32.mxu1 %v205_v3 }
 0x133   :  { %684 = vmatmul.mubr.f32.gmra.mrb[2].mxu1 %v629_v2 }
 0x134   :  { %v632_v4 = vpop.f32.mrb[4].mxu0 }
 0x135   :  { %v215_v5 = vpop.f32.mrb[5].mxu0 }
 0x136   :  { %686 = vmatprep.mubr.f32.mxu1 %v215_v5 }
 0x137   :  { %687 = vmatmul.mubr.f32.gmra.mrb[4].mxu1 %v632_v4 }
 0x138   :  { %v635_v6 = vpop.f32.mrb[6].mxu0 }
 0x139   :  { %v225_v7 = vpop.f32.mrb[7].mxu0 }
 0x13a   :  { %689 = vmatprep.mubr.f32.mxu1 %v225_v7 }
 0x13b   :  { %690 = vmatmul.mubr.f32.gmra.mrb[6].mxu1 %v635_v6 }
 0x13c   :  { %v638_v8 = vpop.f32.mrb[8].mxu0 }
 0x13d   :  { %v235_v9 = vpop.f32.mrb[9].mxu0 }
 0x13e   :  { %692 = vmatprep.mubr.f32.mxu1 %v235_v9 }
 0x13f   :  { %693 = vmatmul.mubr.f32.gmra.mrb[8].mxu1 %v638_v8 }
 0x140   :  { %v641_v10 = vpop.f32.mrb[10].mxu0 }
 0x141   :  { %v245_v11 = vpop.f32.mrb[11].mxu0 }
 0x142   :  { %695 = vmatprep.mubr.f32.mxu1 %v245_v11 }
 0x143   :  { %696 = vmatmul.mubr.f32.gmra.mrb[10].mxu1 %v641_v10 }
 0x144   :  { %v644_v12 = vpop.f32.mrb[12].mxu0 }
 0x145   :  { %v255_v13 = vpop.f32.mrb[13].mxu0 }
 0x146   :  { %698 = vmatprep.mubr.f32.mxu1 %v255_v13 }
 0x147   :  { %699 = vmatmul.mubr.f32.gmra.mrb[12].mxu1 %v644_v12 }
 0x148   :  { %v647_v14 = vpop.f32.mrb[14].mxu0 }
 0x149   :  { %v265_v15 = vpop.f32.mrb[15].mxu0 }
 0x14a   :  { %701 = vmatprep.mubr.f32.mxu1 %v265_v15 }
 0x14b   :  { %702 = vmatmul.mubr.f32.gmra.mrb[14].mxu1 %v647_v14 }
 0x202   :  { %v682_v17 = vpop.f32.mrb[0].mxu1 }
 0x203   :  { %v420_v18 = vadd.f32 %v682_v17, %v527_v16  ;;  %v414_v19 = vpop.f32.mrb[1].mxu1 }
 0x204   :  { %v415_v20 = vadd.f32 %v527_v16, %v414_v19 }
 0x205   :  { %494 = vst [vmem:[#allocation9 + $0x8] sm:$0xff] %v420_v18 }
 0x206   :  { %493 = vst [vmem:[#allocation9] sm:$0xff] %v415_v20  ;;  %v685_v21 = vpop.f32.mrb[2].mxu1 }
 0x207   :  { %v430_v22 = vadd.f32 %v685_v21, %v527_v16  ;;  %v424_v23 = vpop.f32.mrb[3].mxu1 }
 0x208   :  { %v425_v24 = vadd.f32 %v527_v16, %v424_v23 }
 0x209   :  { %496 = vst [vmem:[#allocation9 + $0x18] sm:$0xff] %v430_v22 }
 0x20a   :  { %495 = vst [vmem:[#allocation9 + $0x10] sm:$0xff] %v425_v24  ;;  %v688_v25 = vpop.f32.mrb[4].mxu1 }
 0x20b   :  { %v440_v26 = vadd.f32 %v688_v25, %v527_v16  ;;  %v434_v27 = vpop.f32.mrb[5].mxu1 }
 0x20c   :  { %v435_v28 = vadd.f32 %v527_v16, %v434_v27 }
 0x20d   :  { %498 = vst [vmem:[#allocation9 + $0x28] sm:$0xff] %v440_v26 }
 0x20e   :  { %497 = vst [vmem:[#allocation9 + $0x20] sm:$0xff] %v435_v28  ;;  %v691_v29 = vpop.f32.mrb[6].mxu1 }
 0x20f   :  { %v450_v30 = vadd.f32 %v691_v29, %v527_v16  ;;  %v444_v31 = vpop.f32.mrb[7].mxu1 }
 0x210   :  { %v445_v32 = vadd.f32 %v527_v16, %v444_v31 }
 0x211   :  { %500 = vst [vmem:[#allocation9 + $0x38] sm:$0xff] %v450_v30 }
 0x212   :  { %499 = vst [vmem:[#allocation9 + $0x30] sm:$0xff] %v445_v32  ;;  %v694_v33 = vpop.f32.mrb[8].mxu1 }
 0x213   :  { %v460_v34 = vadd.f32 %v694_v33, %v527_v16  ;;  %v454_v35 = vpop.f32.mrb[9].mxu1 }
 0x214   :  { %v455_v36 = vadd.f32 %v527_v16, %v454_v35 }
 0x215   :  { %502 = vst [vmem:[#allocation9 + $0x48] sm:$0xff] %v460_v34 }
 0x216   :  { %501 = vst [vmem:[#allocation9 + $0x40] sm:$0xff] %v455_v36  ;;  %v697_v37 = vpop.f32.mrb[10].mxu1 }
 0x217   :  { %v470_v38 = vadd.f32 %v697_v37, %v527_v16  ;;  %v464_v39 = vpop.f32.mrb[11].mxu1 }
 0x218   :  { %v465_v40 = vadd.f32 %v527_v16, %v464_v39 }
 0x219   :  { %504 = vst [vmem:[#allocation9 + $0x58] sm:$0xff] %v470_v38 }
 0x21a   :  { %503 = vst [vmem:[#allocation9 + $0x50] sm:$0xff] %v465_v40  ;;  %v700_v41 = vpop.f32.mrb[12].mxu1 }
 0x21b   :  { %v480_v42 = vadd.f32 %v700_v41, %v527_v16  ;;  %v474_v43 = vpop.f32.mrb[13].mxu1 }
 0x21c   :  { %v475_v44 = vadd.f32 %v527_v16, %v474_v43 }
 0x21d   :  { %506 = vst [vmem:[#allocation9 + $0x68] sm:$0xff] %v480_v42 }
 0x21e   :  { %505 = vst [vmem:[#allocation9 + $0x60] sm:$0xff] %v475_v44  ;;  %v703_v45 = vpop.f32.mrb[14].mxu1 }
 0x21f   :  { %v490_v46 = vadd.f32 %v703_v45, %v527_v16  ;;  %v484_v47 = vpop.f32.mrb[15].mxu1 }
 0x220   :  { %v485_v48 = vadd.f32 %v527_v16, %v484_v47 }
 0x221   :  { %508 = vst [vmem:[#allocation9 + $0x78] sm:$0xff] %v490_v46 }
 0x222   :  { %507 = vst [vmem:[#allocation9 + $0x70] sm:$0xff] %v485_v48 }
 0x223   :  { %851 = shalt.err (!%p848_p0)
}
 0x224   :  { %s852_s6 = scalar_lea.hbm %s973_s4, 2048 }
 0x225   :  { %p853_p1 = scmp.ne.s32.totalorder %s973_s4, %s852_s6  ;;  %p856_p2 = scmp.lt.u32.totalorder %s852_s6, %s973_s4 }
 0x227   :  { %p858_p3 = pnand %p856_p2, %p853_p1 }
 0x229   :  { %861 = shalt.err (!%p858_p3)
}
 0x22a   :  { %520 = dma.vmem_to_hbm [thread:$0]  %s515_s26, 2048, %s973_s4, [#allocation5], %s870_s27, %s870_s27, %s871_s28  }
 0x22b   :  { %866 = dma.done.wait [#allocation5], 2048  }
 0x22c   :  { %867 = vsyncadd [#allocation5], 4294965248 }
 0x22d   :  { %524 = vsyncpa [#allocation4], 1 }
 0x22e   :  { %525 = vsyncpa [#allocation7], 1 }
 0x22f   :  { %526 = vsyncpa [#allocation5], 1 }

</bundles_post_ra>
